<compile_context>
chip_gen: v7x
topology: tpu7x:2x2x1
jax: 0.10.0
libtpu: 0.0.40
codegen_flags: <defaults>
</compile_context>

<pallas_src>
import math
import numpy as np
import jax
import jax.numpy as jnp
from jax.experimental import pallas as pl
from jax.experimental.pallas import tpu as pltpu

# ----------------------- model hyperparameters -----------------------
Z_DIM = 32
C_DIM = 0            # c_dim == 0  ->  no embed branch
W_DIM = 32
NUM_WS = 8
NUM_LAYERS = 8
LR_MULTIPLIER = 0.01
LRELU_SLOPE = 0.2
LRELU_GAIN = math.sqrt(2.0)   # bias_act default gain for 'lrelu'
EPS = 1e-8

PAD = 128            # lane-native feature padding

# features_list = [z_dim] + [w_dim]*(num_layers-1) + [w_dim]  (all 32 here)
FEATURES = [Z_DIM] + [W_DIM] * (NUM_LAYERS - 1) + [W_DIM]


def _round_up(x, m):
    return ((x + m - 1) // m) * m


# ----------------------------- kernel ---------------------------------
def mapping_kernel(z_ref, w_ref, b_ref, out_ref):
    """One batch tile of the full mapping network, all in VMEM.

    z_ref:   (TB, PAD)              f32, features zero-padded past Z_DIM
    w_ref:   (L, PAD, PAD)          f32, (in, out) layout, pre-scaled by
                                    weight_gain * sqrt(2), zero-padded
    b_ref:   (L, 1, PAD)            f32, pre-scaled by lr_mult * sqrt(2)
    out_ref: (TB, PAD)              f32, first W_DIM lanes are the result
    """
    x = z_ref[...]

    # normalize_2nd_moment over the real Z_DIM features.
    # Padded lanes are exactly zero, so sum over PAD == sum over Z_DIM.
    mom = jnp.sum(x * x, axis=1, keepdims=True) * jnp.float32(1.0 / Z_DIM)
    x = x * jax.lax.rsqrt(mom + jnp.float32(EPS))

    # 8 FullyConnectedLayer('lrelu', lr_multiplier=0.01), statically unrolled.
    # Gains are pre-folded into w/b, so each layer is dot + bias + leaky_relu.
    for l in range(NUM_LAYERS):
        y = jnp.dot(x, w_ref[l], preferred_element_type=jnp.float32) + b_ref[l]
        x = jnp.maximum(y, jnp.float32(LRELU_SLOPE) * y)

    out_ref[...] = x


# ------------------------- parameter packing ---------------------------
def prepare_params(weights, biases):
    """Fold gains, transpose, and pad the raw torch-style parameters once.

    weights: (L, OUT, IN) raw parameter (torch init: randn / lr_multiplier)
    biases:  (L, OUT)     raw parameter
    Returns (w_packed (L, PAD, PAD), b_packed (L, 1, PAD)) in f32.
    """
    ws, bs = [], []
    for l in range(NUM_LAYERS):
        in_f = FEATURES[l]
        wg = (LR_MULTIPLIER / math.sqrt(in_f)) * LRELU_GAIN
        bg = LR_MULTIPLIER * LRELU_GAIN
        w = (weights[l].astype(jnp.float32) * wg).T          # (IN, OUT)
        b = biases[l].astype(jnp.float32) * bg                # (OUT,)
        w = jnp.pad(w, ((0, PAD - w.shape[0]), (0, PAD - w.shape[1])))
        b = jnp.pad(b, (0, PAD - b.shape[0]))
        ws.append(w)
        bs.append(b)
    return jnp.stack(ws, axis=0), jnp.stack(bs, axis=0)[:, None, :]


# ----------------------------- wrapper ---------------------------------
def mapping_network(z, w_packed, b_packed, num_ws=NUM_WS):
    """z: (B, Z_DIM); packed params from prepare_params.

    Returns ws: (B, num_ws, W_DIM) f32.
    """
    B = z.shape[0]
    TB = 256 if B > 256 else _round_up(max(B, 1), 8)
    B_pad = _round_up(B, TB)

    z_pad = jnp.pad(z.astype(jnp.float32),
                    ((0, B_pad - B), (0, PAD - Z_DIM)))

    out = pl.pallas_call(
        mapping_kernel,
        out_shape=jax.ShapeDtypeStruct((B_pad, PAD), jnp.float32),
        grid=(B_pad // TB,),
        in_specs=[
            pl.BlockSpec((TB, PAD), lambda i: (i, 0)),
            # Constant index maps: the 512 KiB weight slab + biases are fetched
            # once and stay resident across all batch-grid steps.
            pl.BlockSpec((NUM_LAYERS, PAD, PAD), lambda i: (0, 0, 0)),
            pl.BlockSpec((NUM_LAYERS, 1, PAD), lambda i: (0, 0, 0)),
        ],
        out_specs=pl.BlockSpec((TB, PAD), lambda i: (i, 0)),
        compiler_params=pltpu.CompilerParams(
            dimension_semantics=("parallel",)),
    )(z_pad, w_packed, b_packed)

    # Drop padding and do the cheap num_ws broadcast outside the kernel
    # (x.unsqueeze(1).repeat([1, num_ws, 1])).
    x = out[:B, :W_DIM]
    return jnp.broadcast_to(x[:, None, :], (B, num_ws, W_DIM))


# ------------------------- pure-JAX reference ---------------------------
def mapping_reference(z, weights, biases):
    x = z.astype(jnp.float32)
    x = x * jax.lax.rsqrt(jnp.mean(x * x, axis=1, keepdims=True) + EPS)
    for l in range(NUM_LAYERS):
        wg = LR_MULTIPLIER / math.sqrt(FEATURES[l])
        w = weights[l].astype(jnp.float32) * wg
        b = biases[l].astype(jnp.float32) * LR_MULTIPLIER
        y = x @ w.T + b
        x = jnp.where(y >= 0, y, LRELU_SLOPE * y) * LRELU_GAIN
    return jnp.broadcast_to(x[:, None, :], (x.shape[0], NUM_WS, W_DIM))


# ------------------------------- main ----------------------------------
if __name__ == "__main__":
    key = jax.random.PRNGKey(0)
    k_z, k_w, k_b = jax.random.split(key, 3)

    B = 2
    z = jax.random.normal(k_z, (B, Z_DIM), dtype=jnp.float32)

    # Raw parameters, torch-style: weight = randn(out, in) / lr_multiplier.
    # (bias_init is 0 in the module; use small random biases here to exercise
    # the bias path.)
    w_keys = jax.random.split(k_w, NUM_LAYERS)
    weights = jnp.stack(
        [jax.random.normal(w_keys[l], (W_DIM, FEATURES[l]), dtype=jnp.float32)
         / LR_MULTIPLIER
         for l in range(NUM_LAYERS)],
        axis=0,
    )
    biases = 0.1 * jax.random.normal(k_b, (NUM_LAYERS, W_DIM),
                                     dtype=jnp.float32)

    w_packed, b_packed = prepare_params(weights, biases)

    ws = mapping_network(z, w_packed, b_packed)
    ws = jax.block_until_ready(ws)

    ref = mapping_reference(z, weights, biases)
    np.testing.assert_allclose(np.asarray(ws), np.asarray(ref),
                               rtol=1e-5, atol=1e-5)

    # TODO(synk): c_dim==0, truncation_psi==1, update_emas=False -> embed
    # branch, w_avg EMA update, and truncation are no-ops and not implemented.
    print("KERNEL_OK")
</pallas_src>

<mosaic_0001>
module attributes {stable_mosaic.version = 11 : i64} {
  func.func @mapping_kernel(%arg0: i32, %arg1: memref<8x128xf32, #tpu.memory_space<vmem>>, %arg2: memref<8x128x128xf32, #tpu.memory_space<vmem>>, %arg3: memref<8x1x128xf32, #tpu.memory_space<vmem>>, %arg4: memref<8x128xf32, #tpu.memory_space<vmem>>) attributes {dimension_semantics = [#tpu.dimension_semantics<parallel>], iteration_bounds = array<i64: 1>, scalar_prefetch = 0 : i64, scratch_operands = 0 : i64, tpu.core_type = #tpu.core_type<tc>, window_params = [{transform_indices = @transform_0, window_bounds = array<i64: 8, 128>}, {pipeline_mode = #tpu.pipeline_mode<synchronous>, transform_indices = @transform_1, window_bounds = array<i64: 8, 128, 128>}, {pipeline_mode = #tpu.pipeline_mode<synchronous>, transform_indices = @transform_2, window_bounds = array<i64: 8, 1, 128>}, {transform_indices = @transform_3, window_bounds = array<i64: 8, 128>}]} {
    %c0 = arith.constant 0 : index
    %c0_0 = arith.constant 0 : index
    %0 = vector.load %arg1[%c0, %c0_0] : memref<8x128xf32, #tpu.memory_space<vmem>>, vector<8x128xf32>
    %1 = arith.mulf %0, %0 : vector<8x128xf32>
    %cst = arith.constant dense<0.000000e+00> : vector<8xf32>
    %2 = vector.multi_reduction <add>, %1, %cst [1] : vector<8x128xf32> to vector<8xf32>
    %3 = vector.shape_cast %2 : vector<8xf32> to vector<8x1xf32>
    %cst_1 = arith.constant 3.125000e-02 : f32
    %4 = vector.broadcast %cst_1 : f32 to vector<8x1xf32>
    %5 = arith.mulf %3, %4 : vector<8x1xf32>
    %cst_2 = arith.constant 9.99999993E-9 : f32
    %6 = vector.broadcast %cst_2 : f32 to vector<8x1xf32>
    %7 = arith.addf %5, %6 : vector<8x1xf32>
    %8 = math.rsqrt %7 : vector<8x1xf32>
    %9 = vector.broadcast %8 : vector<8x1xf32> to vector<8x128xf32>
    %10 = arith.mulf %0, %9 : vector<8x128xf32>
    %c0_3 = arith.constant 0 : index
    %c0_4 = arith.constant 0 : index
    %c0_5 = arith.constant 0 : index
    %11 = vector.load %arg2[%c0_3, %c0_4, %c0_5] : memref<8x128x128xf32, #tpu.memory_space<vmem>>, vector<1x128x128xf32>
    %12 = vector.shape_cast %11 : vector<1x128x128xf32> to vector<128x128xf32>
    %cst_6 = arith.constant dense<0.000000e+00> : vector<8x128xf32>
    %13 = tpu.matmul %10, %12, %cst_6 {dimension_numbers = #tpu.dot_dimension_numbers<[1], [0], [0], [1], [0, 0, 1, 1], [], []>} : vector<8x128xf32>, vector<128x128xf32>, vector<8x128xf32> -> vector<8x128xf32>
    %c0_7 = arith.constant 0 : index
    %c0_8 = arith.constant 0 : index
    %c0_9 = arith.constant 0 : index
    %14 = vector.load %arg3[%c0_7, %c0_8, %c0_9] : memref<8x1x128xf32, #tpu.memory_space<vmem>>, vector<1x1x128xf32>
    %15 = vector.shape_cast %14 : vector<1x1x128xf32> to vector<1x128xf32>
    %16 = vector.broadcast %15 : vector<1x128xf32> to vector<8x128xf32>
    %17 = arith.addf %13, %16 : vector<8x128xf32>
    %cst_10 = arith.constant 2.000000e-01 : f32
    %18 = vector.broadcast %cst_10 : f32 to vector<8x128xf32>
    %19 = arith.mulf %18, %17 : vector<8x128xf32>
    %20 = arith.maximumf %17, %19 : vector<8x128xf32>
    %c1 = arith.constant 1 : index
    %c0_11 = arith.constant 0 : index
    %c0_12 = arith.constant 0 : index
    %21 = vector.load %arg2[%c1, %c0_11, %c0_12] : memref<8x128x128xf32, #tpu.memory_space<vmem>>, vector<1x128x128xf32>
    %22 = vector.shape_cast %21 : vector<1x128x128xf32> to vector<128x128xf32>
    %cst_13 = arith.constant dense<0.000000e+00> : vector<8x128xf32>
    %23 = tpu.matmul %20, %22, %cst_13 {dimension_numbers = #tpu.dot_dimension_numbers<[1], [0], [0], [1], [0, 0, 1, 1], [], []>} : vector<8x128xf32>, vector<128x128xf32>, vector<8x128xf32> -> vector<8x128xf32>
    %c1_14 = arith.constant 1 : index
    %c0_15 = arith.constant 0 : index
    %c0_16 = arith.constant 0 : index
    %24 = vector.load %arg3[%c1_14, %c0_15, %c0_16] : memref<8x1x128xf32, #tpu.memory_space<vmem>>, vector<1x1x128xf32>
    %25 = vector.shape_cast %24 : vector<1x1x128xf32> to vector<1x128xf32>
    %26 = vector.broadcast %25 : vector<1x128xf32> to vector<8x128xf32>
    %27 = arith.addf %23, %26 : vector<8x128xf32>
    %cst_17 = arith.constant 2.000000e-01 : f32
    %28 = vector.broadcast %cst_17 : f32 to vector<8x128xf32>
    %29 = arith.mulf %28, %27 : vector<8x128xf32>
    %30 = arith.maximumf %27, %29 : vector<8x128xf32>
    %c2 = arith.constant 2 : index
    %c0_18 = arith.constant 0 : index
    %c0_19 = arith.constant 0 : index
    %31 = vector.load %arg2[%c2, %c0_18, %c0_19] : memref<8x128x128xf32, #tpu.memory_space<vmem>>, vector<1x128x128xf32>
    %32 = vector.shape_cast %31 : vector<1x128x128xf32> to vector<128x128xf32>
    %cst_20 = arith.constant dense<0.000000e+00> : vector<8x128xf32>
    %33 = tpu.matmul %30, %32, %cst_20 {dimension_numbers = #tpu.dot_dimension_numbers<[1], [0], [0], [1], [0, 0, 1, 1], [], []>} : vector<8x128xf32>, vector<128x128xf32>, vector<8x128xf32> -> vector<8x128xf32>
    %c2_21 = arith.constant 2 : index
    %c0_22 = arith.constant 0 : index
    %c0_23 = arith.constant 0 : index
    %34 = vector.load %arg3[%c2_21, %c0_22, %c0_23] : memref<8x1x128xf32, #tpu.memory_space<vmem>>, vector<1x1x128xf32>
    %35 = vector.shape_cast %34 : vector<1x1x128xf32> to vector<1x128xf32>
    %36 = vector.broadcast %35 : vector<1x128xf32> to vector<8x128xf32>
    %37 = arith.addf %33, %36 : vector<8x128xf32>
    %cst_24 = arith.constant 2.000000e-01 : f32
    %38 = vector.broadcast %cst_24 : f32 to vector<8x128xf32>
    %39 = arith.mulf %38, %37 : vector<8x128xf32>
    %40 = arith.maximumf %37, %39 : vector<8x128xf32>
    %c3 = arith.constant 3 : index
    %c0_25 = arith.constant 0 : index
    %c0_26 = arith.constant 0 : index
    %41 = vector.load %arg2[%c3, %c0_25, %c0_26] : memref<8x128x128xf32, #tpu.memory_space<vmem>>, vector<1x128x128xf32>
    %42 = vector.shape_cast %41 : vector<1x128x128xf32> to vector<128x128xf32>
    %cst_27 = arith.constant dense<0.000000e+00> : vector<8x128xf32>
    %43 = tpu.matmul %40, %42, %cst_27 {dimension_numbers = #tpu.dot_dimension_numbers<[1], [0], [0], [1], [0, 0, 1, 1], [], []>} : vector<8x128xf32>, vector<128x128xf32>, vector<8x128xf32> -> vector<8x128xf32>
    %c3_28 = arith.constant 3 : index
    %c0_29 = arith.constant 0 : index
    %c0_30 = arith.constant 0 : index
    %44 = vector.load %arg3[%c3_28, %c0_29, %c0_30] : memref<8x1x128xf32, #tpu.memory_space<vmem>>, vector<1x1x128xf32>
    %45 = vector.shape_cast %44 : vector<1x1x128xf32> to vector<1x128xf32>
    %46 = vector.broadcast %45 : vector<1x128xf32> to vector<8x128xf32>
    %47 = arith.addf %43, %46 : vector<8x128xf32>
    %cst_31 = arith.constant 2.000000e-01 : f32
    %48 = vector.broadcast %cst_31 : f32 to vector<8x128xf32>
    %49 = arith.mulf %48, %47 : vector<8x128xf32>
    %50 = arith.maximumf %47, %49 : vector<8x128xf32>
    %c4 = arith.constant 4 : index
    %c0_32 = arith.constant 0 : index
    %c0_33 = arith.constant 0 : index
    %51 = vector.load %arg2[%c4, %c0_32, %c0_33] : memref<8x128x128xf32, #tpu.memory_space<vmem>>, vector<1x128x128xf32>
    %52 = vector.shape_cast %51 : vector<1x128x128xf32> to vector<128x128xf32>
    %cst_34 = arith.constant dense<0.000000e+00> : vector<8x128xf32>
    %53 = tpu.matmul %50, %52, %cst_34 {dimension_numbers = #tpu.dot_dimension_numbers<[1], [0], [0], [1], [0, 0, 1, 1], [], []>} : vector<8x128xf32>, vector<128x128xf32>, vector<8x128xf32> -> vector<8x128xf32>
    %c4_35 = arith.constant 4 : index
    %c0_36 = arith.constant 0 : index
    %c0_37 = arith.constant 0 : index
    %54 = vector.load %arg3[%c4_35, %c0_36, %c0_37] : memref<8x1x128xf32, #tpu.memory_space<vmem>>, vector<1x1x128xf32>
    %55 = vector.shape_cast %54 : vector<1x1x128xf32> to vector<1x128xf32>
    %56 = vector.broadcast %55 : vector<1x128xf32> to vector<8x128xf32>
    %57 = arith.addf %53, %56 : vector<8x128xf32>
    %cst_38 = arith.constant 2.000000e-01 : f32
    %58 = vector.broadcast %cst_38 : f32 to vector<8x128xf32>
    %59 = arith.mulf %58, %57 : vector<8x128xf32>
    %60 = arith.maximumf %57, %59 : vector<8x128xf32>
    %c5 = arith.constant 5 : index
    %c0_39 = arith.constant 0 : index
    %c0_40 = arith.constant 0 : index
    %61 = vector.load %arg2[%c5, %c0_39, %c0_40] : memref<8x128x128xf32, #tpu.memory_space<vmem>>, vector<1x128x128xf32>
    %62 = vector.shape_cast %61 : vector<1x128x128xf32> to vector<128x128xf32>
    %cst_41 = arith.constant dense<0.000000e+00> : vector<8x128xf32>
    %63 = tpu.matmul %60, %62, %cst_41 {dimension_numbers = #tpu.dot_dimension_numbers<[1], [0], [0], [1], [0, 0, 1, 1], [], []>} : vector<8x128xf32>, vector<128x128xf32>, vector<8x128xf32> -> vector<8x128xf32>
    %c5_42 = arith.constant 5 : index
    %c0_43 = arith.constant 0 : index
    %c0_44 = arith.constant 0 : index
    %64 = vector.load %arg3[%c5_42, %c0_43, %c0_44] : memref<8x1x128xf32, #tpu.memory_space<vmem>>, vector<1x1x128xf32>
    %65 = vector.shape_cast %64 : vector<1x1x128xf32> to vector<1x128xf32>
    %66 = vector.broadcast %65 : vector<1x128xf32> to vector<8x128xf32>
    %67 = arith.addf %63, %66 : vector<8x128xf32>
    %cst_45 = arith.constant 2.000000e-01 : f32
    %68 = vector.broadcast %cst_45 : f32 to vector<8x128xf32>
    %69 = arith.mulf %68, %67 : vector<8x128xf32>
    %70 = arith.maximumf %67, %69 : vector<8x128xf32>
    %c6 = arith.constant 6 : index
    %c0_46 = arith.constant 0 : index
    %c0_47 = arith.constant 0 : index
    %71 = vector.load %arg2[%c6, %c0_46, %c0_47] : memref<8x128x128xf32, #tpu.memory_space<vmem>>, vector<1x128x128xf32>
    %72 = vector.shape_cast %71 : vector<1x128x128xf32> to vector<128x128xf32>
    %cst_48 = arith.constant dense<0.000000e+00> : vector<8x128xf32>
    %73 = tpu.matmul %70, %72, %cst_48 {dimension_numbers = #tpu.dot_dimension_numbers<[1], [0], [0], [1], [0, 0, 1, 1], [], []>} : vector<8x128xf32>, vector<128x128xf32>, vector<8x128xf32> -> vector<8x128xf32>
    %c6_49 = arith.constant 6 : index
    %c0_50 = arith.constant 0 : index
    %c0_51 = arith.constant 0 : index
    %74 = vector.load %arg3[%c6_49, %c0_50, %c0_51] : memref<8x1x128xf32, #tpu.memory_space<vmem>>, vector<1x1x128xf32>
    %75 = vector.shape_cast %74 : vector<1x1x128xf32> to vector<1x128xf32>
    %76 = vector.broadcast %75 : vector<1x128xf32> to vector<8x128xf32>
    %77 = arith.addf %73, %76 : vector<8x128xf32>
    %cst_52 = arith.constant 2.000000e-01 : f32
    %78 = vector.broadcast %cst_52 : f32 to vector<8x128xf32>
    %79 = arith.mulf %78, %77 : vector<8x128xf32>
    %80 = arith.maximumf %77, %79 : vector<8x128xf32>
    %c7 = arith.constant 7 : index
    %c0_53 = arith.constant 0 : index
    %c0_54 = arith.constant 0 : index
    %81 = vector.load %arg2[%c7, %c0_53, %c0_54] : memref<8x128x128xf32, #tpu.memory_space<vmem>>, vector<1x128x128xf32>
    %82 = vector.shape_cast %81 : vector<1x128x128xf32> to vector<128x128xf32>
    %cst_55 = arith.constant dense<0.000000e+00> : vector<8x128xf32>
    %83 = tpu.matmul %80, %82, %cst_55 {dimension_numbers = #tpu.dot_dimension_numbers<[1], [0], [0], [1], [0, 0, 1, 1], [], []>} : vector<8x128xf32>, vector<128x128xf32>, vector<8x128xf32> -> vector<8x128xf32>
    %c7_56 = arith.constant 7 : index
    %c0_57 = arith.constant 0 : index
    %c0_58 = arith.constant 0 : index
    %84 = vector.load %arg3[%c7_56, %c0_57, %c0_58] : memref<8x1x128xf32, #tpu.memory_space<vmem>>, vector<1x1x128xf32>
    %85 = vector.shape_cast %84 : vector<1x1x128xf32> to vector<1x128xf32>
    %86 = vector.broadcast %85 : vector<1x128xf32> to vector<8x128xf32>
    %87 = arith.addf %83, %86 : vector<8x128xf32>
    %cst_59 = arith.constant 2.000000e-01 : f32
    %88 = vector.broadcast %cst_59 : f32 to vector<8x128xf32>
    %89 = arith.mulf %88, %87 : vector<8x128xf32>
    %90 = arith.maximumf %87, %89 : vector<8x128xf32>
    %c0_60 = arith.constant 0 : index
    %c0_61 = arith.constant 0 : index
    %91 = vector.load %arg4[%c0_60, %c0_61] : memref<8x128xf32, #tpu.memory_space<vmem>>, vector<8x128xf32>
    tpu.vector_store %arg4[%c0_60, %c0_61], %90 {strides = array<i32>} : memref<8x128xf32, #tpu.memory_space<vmem>>, vector<8x128xf32>,
    return
  }
  func.func @transform_0(%arg0: i32) -> (i32, i32) {
    %c0_i32 = arith.constant 0 : i32
    %c0_i32_0 = arith.constant 0 : i32
    return %arg0, %c0_i32 : i32, i32
  }
  func.func @transform_1(%arg0: i32) -> (i32, i32, i32) {
    %c0_i32 = arith.constant 0 : i32
    %c0_i32_0 = arith.constant 0 : i32
    %c0_i32_1 = arith.constant 0 : i32
    %c0_i32_2 = arith.constant 0 : i32
    return %c0_i32, %c0_i32_0, %c0_i32_1 : i32, i32, i32
  }
  func.func @transform_2(%arg0: i32) -> (i32, i32, i32) {
    %c0_i32 = arith.constant 0 : i32
    %c0_i32_0 = arith.constant 0 : i32
    %c0_i32_1 = arith.constant 0 : i32
    %c0_i32_2 = arith.constant 0 : i32
    return %c0_i32, %c0_i32_0, %c0_i32_1 : i32, i32, i32
  }
  func.func @transform_3(%arg0: i32) -> (i32, i32) {
    %c0_i32 = arith.constant 0 : i32
    %c0_i32_0 = arith.constant 0 : i32
    return %arg0, %c0_i32 : i32, i32
  }
}

</mosaic_0001>

<bundles_post_ra>
// kernel: tpu_custom_call.1
= control target key start
LH: loop header
LB: loop body
LE: loop exit
PB: predicated region body
PF: predicated region fallthrough
CT: control target
= control target key end

     0   :  { %8 = vsyncpa [#allocation3], 0  ;;  %s1740_s0 = inlined_call_operand.hbm [shape: f32[8,128], index: 0, kind: input, shape index: {}]   ;;  %s1741_s1 = inlined_call_operand.hbm [shape: f32[8,128,128], index: 1, kind: input, shape index: {}]   ;;  %s1742_s2 = inlined_call_operand.hbm [shape: f32[8,1,128], index: 2, kind: input, shape index: {}]   ;;  %s1743_s3 = inlined_call_operand.hbm [shape: f32[8,128], index: 3, kind: output, shape index: {}]  }
   0x1   :  { %9 = vsyncpa [#allocation6], 0 }
   0x2   :  { %10 = vsyncpa [#allocation4], 0  ;;  %s1576_s12 = smov [#allocation5]   ;;  %s1482_s16 = scalar_lea.hbm %s1741_s1, 16384 }
   0x3   :  { %s26_s13 = sshll.u32 %s1576_s12, 4  ;;  %p1483_p0 = scmp.ne.s32.totalorder %s1741_s1, %s1482_s16  ;;  %s27_s13 = int_to_ptr.vmem [resolvable:$true] %s26_s13 }
   0x4   :  { %p1486_p1 = scmp.lt.u32.totalorder %s1482_s16, %s1741_s1 }
   0x6   :  { %p1488_p2 = pnand %p1486_p1, %p1483_p0 }
   0x8   :  { %1491 = shalt.err (!%p1488_p2)
}
   0x9   :  { %s1492_s21 = scalar_lea.vmem %s27_s13, 16384  ;;  %p1497_p4 = scmp.lt.s32.totalorder %s27_s13, %s27_s13 }
   0xa   :  { %p1493_p3 = scmp.ne.s32.totalorder %s27_s13, %s1492_s21  ;;  %p1498_p5 = scmp.lt.s32.totalorder %s1492_s21, %s1492_s21 }
   0xc   :  { %p1499_p6 = por %p1498_p5, %p1497_p4 }
   0xe   :  { %p1500_p7 = pnand %p1499_p6, %p1493_p3 }
  0x10   :  { %1503 = shalt.err (!%p1500_p7)
}
  0x11   :  { %s1577_s22 = smov 128   ;;  %s1578_s23 = smov 8  }
  0x12   :  { %32 = dma.hbm_to_vmem [thread:$0]  %s1741_s1, 16384, %s27_s13, [#allocation6], %s1577_s22, %s1577_s22, %s1578_s23  }
  0x13   :  { %s1579_s26 = smov [#allocation2]   ;;  %s1580_s28 = smov [#allocation7]  }
  0x14   :  { %s17_s27 = sshll.u32 %s1579_s26, 4  ;;  %s38_s29 = sshll.u32 %s1580_s28, 4  ;;  %s18_s27 = int_to_ptr.vmem [resolvable:$true] %s17_s27  ;;  %s39_s29 = int_to_ptr.vmem [resolvable:$true] %s38_s29 }
  0x15   :  { %s1504_s5 = scalar_lea.hbm %s1740_s0, 128 }
  0x16   :  { %p1505_p8 = scmp.ne.s32.totalorder %s1740_s0, %s1504_s5  ;;  %p1508_p9 = scmp.lt.u32.totalorder %s1504_s5, %s1740_s0 }
  0x18   :  { %p1510_p10 = pnand %p1508_p9, %p1505_p8 }
  0x1a   :  { %1513 = shalt.err (!%p1510_p10)
}
  0x1b   :  { %s1514_s1 = scalar_lea.vmem %s18_s27, 128  ;;  %p1519_p12 = scmp.lt.s32.totalorder %s18_s27, %s18_s27 }
  0x1c   :  { %p1515_p11 = scmp.ne.s32.totalorder %s18_s27, %s1514_s1  ;;  %p1520_p13 = scmp.lt.s32.totalorder %s1514_s1, %s1514_s1 }
  0x1e   :  { %p1521_p0 = por %p1520_p13, %p1519_p12 }
  0x20   :  { %p1522_p1 = pnand %p1521_p0, %p1515_p11 }
  0x22   :  { %1525 = shalt.err (!%p1522_p1)
}
  0x23   :  { %20 = dma.hbm_to_vmem [thread:$0]  %s1740_s0, 128, %s18_s27, [#allocation3]  }
  0x24   :  { %s1526_s14 = scalar_lea.hbm %s1742_s2, 128 }
  0x25   :  { %p1527_p2 = scmp.ne.s32.totalorder %s1742_s2, %s1526_s14  ;;  %p1530_p3 = scmp.lt.u32.totalorder %s1526_s14, %s1742_s2 }
  0x27   :  { %p1532_p4 = pnand %p1530_p3, %p1527_p2 }
  0x29   :  { %1535 = shalt.err (!%p1532_p4)
}
  0x2a   :  { %s1536_s19 = scalar_lea.vmem %s39_s29, 128  ;;  %p1541_p6 = scmp.lt.s32.totalorder %s39_s29, %s39_s29 }
  0x2b   :  { %p1537_p5 = scmp.ne.s32.totalorder %s39_s29, %s1536_s19  ;;  %p1542_p7 = scmp.lt.s32.totalorder %s1536_s19, %s1536_s19 }
  0x2d   :  { %p1543_p8 = por %p1542_p7, %p1541_p6 }
  0x2f   :  { %p1544_p9 = pnand %p1543_p8, %p1537_p5 }
  0x31   :  { %1547 = shalt.err (!%p1544_p9)
}
  0x32   :  { %s1581_s0 = smov 16   ;;  %s1582_s20 = smov 1  }
  0x33   :  { %44 = dma.hbm_to_vmem [thread:$0]  %s1742_s2, 128, %s39_s29, [#allocation6], %s1581_s0, %s1581_s0, %s1582_s20  }
  0x34   :  { %1570 = dma.done.wait [#allocation3], 128  }
  0x35   :  { %1571 = vsyncadd [#allocation3], 4294967168 }
  0x36   :  { %1572 = dma.done.wait [#allocation6], 16512  }
  0x37   :  { %1573 = vsyncadd [#allocation6], 4294950784  ;;  %v1583_v0 = vmov 0.0|0.0   ;;  %v1645_v1 = vld [vmem:[#allocation2] sm:$0xff]  ;;  %v62_v2 = vld [vmem:[#allocation5] sm:$0xff]  ;;  %vm1584_vm0 = vmmov 0  }
  0x38   :  { %1277 = vmatprep.subr.bf16.mxu0 %v1583_v0  ;;  %1301 = vmatprep.subr.bf16.mxu1 %v1583_v0  ;;  %v63_v3 = vld [vmem:[#allocation5 + $0x8] sm:$0xff]  ;;  %v55_v4 = vmul.f32 %v1645_v1, %v1645_v1  ;;  %v64_v6 = vld [vmem:[#allocation5 + $0x10] sm:$0xff]  ;;  %v65_v7 = vld [vmem:[#allocation5 + $0x18] sm:$0xff]  ;;  %v1585_v23 = vmov 0.0   ;;  %s1586_s2 = smov [#allocation8]  }
  0x39   :  { %v1278_v5 = vpack.c.bf16 %v63_v3, %v62_v2  ;;  %v1281_v8 = vpack.c.bf16 %v65_v7, %v64_v6  ;;  %v66_v9 = vld [vmem:[#allocation5 + $0x20] sm:$0xff]  ;;  %v67_v10 = vld [vmem:[#allocation5 + $0x28] sm:$0xff]  ;;  %v68_v12 = vld [vmem:[#allocation5 + $0x30] sm:$0xff]  ;;  %1029 = vmatprep.mubr.msk.f32.mxu0 %vm1584_vm0, %v1585_v23  ;;  %1064 = vmatprep.mubr.msk.f32.mxu1 %vm1584_vm0, %v1585_v23  ;;  %s843_s23 = sshll.u32 %s1586_s2, 4  ;;  %s844_s23 = int_to_ptr.vmem [resolvable:$true] %s843_s23 }
  0x3a   :  { %56 = vadd.xlane.f32.xlu0 %v55_v4  ;;  %v1284_v11 = vpack.c.bf16 %v67_v10, %v66_v9  ;;  %v69_v13 = vld [vmem:[#allocation5 + $0x38] sm:$0xff]  ;;  %v70_v15 = vld [vmem:[#allocation5 + $0x40] sm:$0xff]  ;;  %v71_v16 = vld [vmem:[#allocation5 + $0x48] sm:$0xff]  ;;  %s1548_s24 = scalar_lea.vmem %s844_s23, 128  ;;  %p1553_p11 = scmp.lt.s32.totalorder %s844_s23, %s844_s23 }
  0x3b   :  { %1279 = vmatpush3.bf16.msra.mxu0 %v1278_v5  ;;  %v1287_v14 = vpack.c.bf16 %v69_v13, %v68_v12  ;;  %v1290_v17 = vpack.c.bf16 %v71_v16, %v70_v15  ;;  %v72_v18 = vld [vmem:[#allocation5 + $0x50] sm:$0xff]  ;;  %v73_v19 = vld [vmem:[#allocation5 + $0x58] sm:$0xff]  ;;  %v74_v21 = vld [vmem:[#allocation5 + $0x60] sm:$0xff]  ;;  %p1549_p10 = scmp.ne.s32.totalorder %s844_s23, %s1548_s24  ;;  %p1554_p12 = scmp.lt.s32.totalorder %s1548_s24, %s1548_s24 }
  0x3c   :  { %1280 = vmatprep.subr.bf16.mxu0 %v1583_v0  ;;  %v1293_v20 = vpack.c.bf16 %v73_v19, %v72_v18  ;;  %v75_v22 = vld [vmem:[#allocation5 + $0x68] sm:$0xff]  ;;  %v76_v25 = vld [vmem:[#allocation5 + $0x70] sm:$0xff]  ;;  %v77_v26 = vld [vmem:[#allocation5 + $0x78] sm:$0xff] }
  0x3d   :  { %v1296_v24 = vpack.c.bf16 %v75_v22, %v74_v21  ;;  %v1299_v27 = vpack.c.bf16 %v77_v26, %v76_v25  ;;  %v158_v28 = vld [vmem:[#allocation5 + $0x80] sm:$0xff]  ;;  %v159_v29 = vld [vmem:[#allocation5 + $0x88] sm:$0xff]  ;;  %v160_v30 = vld [vmem:[#allocation5 + $0x90] sm:$0xff]  ;;  %p1555_p13 = por %p1554_p12, %p1553_p11 }
  0x3e   :  { %v1302_v31 = vpack.c.bf16 %v159_v29, %v158_v28  ;;  %v161_v32 = vld [vmem:[#allocation5 + $0x98] sm:$0xff]  ;;  %v162_v34 = vld [vmem:[#allocation5 + $0xa0] sm:$0xff]  ;;  %v163_v35 = vld [vmem:[#allocation5 + $0xa8] sm:$0xff] }
  0x3f   :  { %1282 = vmatpush3.bf16.msra.mxu0 %v1281_v8  ;;  %v1305_v33 = vpack.c.bf16 %v161_v32, %v160_v30  ;;  %v1308_v36 = vpack.c.bf16 %v163_v35, %v162_v34  ;;  %v164_v37 = vld [vmem:[#allocation5 + $0xb0] sm:$0xff]  ;;  %v165_v38 = vld [vmem:[#allocation5 + $0xb8] sm:$0xff]  ;;  %v166_v40 = vld [vmem:[#allocation5 + $0xc0] sm:$0xff]  ;;  %p1556_p0 = pnand %p1555_p13, %p1549_p10 }
  0x40   :  { %1283 = vmatprep.subr.bf16.mxu0 %v1583_v0  ;;  %1303 = vmatpush3.bf16.msra.mxu1 %v1302_v31  ;;  %v1311_v39 = vpack.c.bf16 %v165_v38, %v164_v37  ;;  %v167_v41 = vld [vmem:[#allocation5 + $0xc8] sm:$0xff]  ;;  %v168_v43 = vld [vmem:[#allocation5 + $0xd0] sm:$0xff]  ;;  %v169_v44 = vld [vmem:[#allocation5 + $0xd8] sm:$0xff] }
  0x41   :  { %1304 = vmatprep.subr.bf16.mxu1 %v1583_v0  ;;  %v1314_v42 = vpack.c.bf16 %v167_v41, %v166_v40  ;;  %v1317_v45 = vpack.c.bf16 %v169_v44, %v168_v43  ;;  %v170_v51 = vld [vmem:[#allocation5 + $0xe0] sm:$0xff]  ;;  %v171_v52 = vld [vmem:[#allocation5 + $0xe8] sm:$0xff]  ;;  %v172_v54 = vld [vmem:[#allocation5 + $0xf0] sm:$0xff] }
  0x42   :  { %v1320_v53 = vpack.c.bf16 %v171_v52, %v170_v51  ;;  %v173_v55 = vld [vmem:[#allocation5 + $0xf8] sm:$0xff]  ;;  %v255_v57 = vld [vmem:[#allocation5 + $0x100] sm:$0xff]  ;;  %v256_v58 = vld [vmem:[#allocation5 + $0x108] sm:$0xff] }
  0x43   :  { %1285 = vmatpush3.bf16.msra.mxu0 %v1284_v11  ;;  %v1323_v56 = vpack.c.bf16 %v173_v55, %v172_v54  ;;  %v257_v59 = vld [vmem:[#allocation5 + $0x110] sm:$0xff]  ;;  %v1326_v60 = vpack.c.bf16 %v256_v58, %v255_v57  ;;  %v258_v61 = vld [vmem:[#allocation5 + $0x118] sm:$0xff]  ;;  %v259_v63 = vld [vmem:[#allocation5 + $0x120] sm:$0xff] }
  0x44   :  { %1286 = vmatprep.subr.bf16.mxu0 %v1583_v0  ;;  %1306 = vmatpush3.bf16.msra.mxu1 %v1305_v33  ;;  %v1329_v62 = vpack.c.bf16 %v258_v61, %v257_v59  ;;  %v261_v3 = vld [vmem:[#allocation5 + $0x130] sm:$0xff]  ;;  %v262_v4 = vld [vmem:[#allocation5 + $0x138] sm:$0xff]  ;;  %v263_v6 = vld [vmem:[#allocation5 + $0x140] sm:$0xff] }
  0x45   :  { %1307 = vmatprep.subr.bf16.mxu1 %v1583_v0  ;;  %v1335_v5 = vpack.c.bf16 %v262_v4, %v261_v3  ;;  %v264_v7 = vld [vmem:[#allocation5 + $0x148] sm:$0xff]  ;;  %v265_v9 = vld [vmem:[#allocation5 + $0x150] sm:$0xff]  ;;  %v266_v10 = vld [vmem:[#allocation5 + $0x158] sm:$0xff] }
  0x46   :  { %v1338_v8 = vpack.c.bf16 %v264_v7, %v263_v6  ;;  %v1341_v11 = vpack.c.bf16 %v266_v10, %v265_v9  ;;  %v853_v12 = vld [vmem:[#allocation7] ss:$0 sm:$0xff]  ;;  %v268_v19 = vld [vmem:[#allocation5 + $0x168] sm:$0xff]  ;;  %v269_v21 = vld [vmem:[#allocation5 + $0x170] sm:$0xff] }
  0x47   :  { %1288 = vmatpush3.bf16.msra.mxu0 %v1287_v14  ;;  %v267_v18 = vld [vmem:[#allocation5 + $0x160] sm:$0xff]  ;;  %v270_v22 = vld [vmem:[#allocation5 + $0x178] sm:$0xff]  ;;  %v353_v26 = vld [vmem:[#allocation5 + $0x188] sm:$0xff] }
  0x48   :  { %1289 = vmatprep.subr.bf16.mxu0 %v1583_v0  ;;  %1309 = vmatpush3.bf16.msra.mxu1 %v1308_v36  ;;  %v352_v25 = vld [vmem:[#allocation5 + $0x180] sm:$0xff]  ;;  %v355_v29 = vld [vmem:[#allocation5 + $0x198] sm:$0xff]  ;;  %v357_v32 = vld [vmem:[#allocation5 + $0x1a8] sm:$0xff] }
  0x49   :  { %1310 = vmatprep.subr.bf16.mxu1 %v1583_v0  ;;  %v1350_v28 = vpack.c.bf16 %v353_v26, %v352_v25  ;;  %v356_v31 = vld [vmem:[#allocation5 + $0x1a0] sm:$0xff]  ;;  %v358_v34 = vld [vmem:[#allocation5 + $0x1b0] sm:$0xff]  ;;  %v359_v35 = vld [vmem:[#allocation5 + $0x1b8] sm:$0xff] }
  0x4a   :  { %v1356_v33 = vpack.c.bf16 %v357_v32, %v356_v31  ;;  %v1359_v36 = vpack.c.bf16 %v359_v35, %v358_v34  ;;  %v360_v37 = vld [vmem:[#allocation5 + $0x1c0] sm:$0xff]  ;;  %v361_v38 = vld [vmem:[#allocation5 + $0x1c8] sm:$0xff]  ;;  %v362_v40 = vld [vmem:[#allocation5 + $0x1d0] sm:$0xff] }
  0x4b   :  { %1291 = vmatpush3.bf16.msra.mxu0 %v1290_v17  ;;  %v363_v41 = vld [vmem:[#allocation5 + $0x1d8] sm:$0xff]  ;;  %v854_v43 = vld [vmem:[#allocation7 + $0x1] ss:$0 sm:$0xff]  ;;  %v366_v52 = vld [vmem:[#allocation5 + $0x1f0] sm:$0xff] }
  0x4c   :  { %1292 = vmatprep.subr.bf16.mxu0 %v1583_v0  ;;  %1312 = vmatpush3.bf16.msra.mxu1 %v1311_v39  ;;  %v1362_v39 = vpack.c.bf16 %v361_v38, %v360_v37  ;;  %v449_v55 = vld [vmem:[#allocation5 + $0x200] sm:$0xff]  ;;  %v451_v57 = vld [vmem:[#allocation5 + $0x210] sm:$0xff]  ;;  %v452_v59 = vld [vmem:[#allocation5 + $0x218] sm:$0xff] }
  0x4d   :  { %1313 = vmatprep.subr.bf16.mxu1 %v1583_v0  ;;  %v453_v61 = vld [vmem:[#allocation5 + $0x220] sm:$0xff]  ;;  %v459_v7 = vld [vmem:[#allocation5 + $0x250] sm:$0xff] }
  0x4e   :  { %v457_v4 = vld [vmem:[#allocation5 + $0x240] sm:$0xff]  ;;  %v548_v25 = vld [vmem:[#allocation5 + $0x290] sm:$0xff] }
  0x4f   :  { %1294 = vmatpush3.bf16.msra.mxu0 %v1293_v20  ;;  %v1344_v20 = vpack.c.bf16 %v268_v19, %v267_v18  ;;  %v855_v10 = vld [vmem:[#allocation7 + $0x2] ss:$0 sm:$0xff]  ;;  %v463_v19 = vld [vmem:[#allocation5 + $0x270] sm:$0xff] }
  0x50   :  { %1295 = vmatprep.subr.bf16.mxu0 %v1583_v0  ;;  %1315 = vmatpush3.bf16.msra.mxu1 %v1314_v42  ;;  %v1365_v42 = vpack.c.bf16 %v363_v41, %v362_v40  ;;  %v552_v32 = vld [vmem:[#allocation5 + $0x2b0] sm:$0xff]  ;;  %v554_v35 = vld [vmem:[#allocation5 + $0x2c0] sm:$0xff] }
  0x51   :  { %1316 = vmatprep.subr.bf16.mxu1 %v1583_v0  ;;  %v556_v38 = vld [vmem:[#allocation5 + $0x2d0] sm:$0xff]  ;;  %v856_v41 = vld [vmem:[#allocation7 + $0x3] ss:$0 sm:$0xff] }
  0x53   :  { %1297 = vmatpush3.bf16.msra.mxu0 %v1296_v24  ;;  %v1347_v24 = vpack.c.bf16 %v270_v22, %v269_v21  ;;  %v546_v22 = vld [vmem:[#allocation5 + $0x280] sm:$0xff] }
  0x54   :  { %1298 = vmatprep.subr.bf16.mxu0 %v1583_v0  ;;  %1318 = vmatpush3.bf16.msra.mxu1 %v1317_v45 }
  0x55   :  { %1319 = vmatprep.subr.bf16.mxu1 %v1583_v0 }
  0x57   :  { %1300 = vmatpush3.bf16.msra.mxu0 %v1299_v27  ;;  %v354_v27 = vld [vmem:[#allocation5 + $0x190] sm:$0xff] }
  0x58   :  { %1325 = vmatprep.subr.bf16.mxu0 %v1583_v0  ;;  %1321 = vmatpush3.bf16.msra.mxu1 %v1320_v53  ;;  %v1353_v30 = vpack.c.bf16 %v355_v29, %v354_v27  ;;  %v367_v53 = vld [vmem:[#allocation5 + $0x1f8] sm:$0xff]  ;;  %v550_v29 = vld [vmem:[#allocation5 + $0x2a0] sm:$0xff] }
  0x59   :  { %1322 = vmatprep.subr.bf16.mxu1 %v1583_v0  ;;  %v1371_v54 = vpack.c.bf16 %v367_v53, %v366_v52  ;;  %v549_v27 = vld [vmem:[#allocation5 + $0x298] sm:$0xff]  ;;  %v643_v53 = vld [vmem:[#allocation5 + $0x300] sm:$0xff] }
  0x5c   :  { %1324 = vmatpush3.bf16.msra.mxu1 %v1323_v56  ;;  %v450_v56 = vld [vmem:[#allocation5 + $0x208] sm:$0xff] }
  0x5d   :  { %1349 = vmatprep.subr.bf16.mxu1 %v1583_v0  ;;  %v1374_v58 = vpack.c.bf16 %v450_v56, %v449_v55  ;;  %v645_v55 = vld [vmem:[#allocation5 + $0x310] sm:$0xff] }
  0xc7   :  { %v57_v46 = vpop.xlane.xlu0 %56 }
  0xc8   :  { %v58_v47 = vmul.f32 0.03125, %v57_v46 }
  0xca   :  { %v59_v48 = vadd.f32 1e-08, %v58_v47 }
  0xcc   :  { %1480 = vrsqrt.f32 %v59_v48 }
  0xd6   :  { %v1481_v49 = vpop.eup %1480 }
  0xd7   :  { %v61_v50 = vmul.f32 %v1481_v49, %v1645_v1  ;;  %v260_v1 = vld [vmem:[#allocation5 + $0x128] sm:$0xff]  ;;  %v364_v49 = vld [vmem:[#allocation5 + $0x1e0] sm:$0xff] }
  0xd8   :  { %v1332_v2 = vpack.c.bf16 %v260_v1, %v259_v63  ;;  %v455_v1 = vld [vmem:[#allocation5 + $0x230] sm:$0xff] }
  0xd9   :  { %1030 = vmatmul.mubr.f32.vlgmr.msra.gmra.mrb[0].mxu0 %v61_v50  ;;  %v365_v50 = vld [vmem:[#allocation5 + $0x1e8] sm:$0xff] }
  0xda   :  { %1099 = vmatprep.mubr.msk.f32.mxu0 %vm1584_vm0, %v1585_v23  ;;  %1327 = vmatpush3.bf16.msra.mxu0 %v1326_v60  ;;  %v1368_v51 = vpack.c.bf16 %v365_v50, %v364_v49  ;;  %v1377_v60 = vpack.c.bf16 %v452_v59, %v451_v57  ;;  %v560_v50 = vld [vmem:[#allocation5 + $0x2f0] sm:$0xff]  ;;  %v646_v57 = vld [vmem:[#allocation5 + $0x318] sm:$0xff]  ;;  %v647_v59 = vld [vmem:[#allocation5 + $0x320] sm:$0xff] }
  0xdb   :  { %1328 = vmatprep.subr.bf16.mxu0 %v1583_v0 }
  0xde   :  { %1330 = vmatpush3.bf16.msra.mxu0 %v1329_v62  ;;  %v454_v62 = vld [vmem:[#allocation5 + $0x228] sm:$0xff] }
  0xdf   :  { %1331 = vmatprep.subr.bf16.mxu0 %v1583_v0  ;;  %v1380_v63 = vpack.c.bf16 %v454_v62, %v453_v61  ;;  %v649_v62 = vld [vmem:[#allocation5 + $0x330] sm:$0xff] }
  0xe2   :  { %1333 = vmatpush3.bf16.msra.mxu0 %v1332_v2  ;;  %v456_v2 = vld [vmem:[#allocation5 + $0x238] sm:$0xff] }
  0xe3   :  { %1334 = vmatprep.subr.bf16.mxu0 %v1583_v0  ;;  %v1383_v3 = vpack.c.bf16 %v456_v2, %v455_v1  ;;  %v651_v2 = vld [vmem:[#allocation5 + $0x340] sm:$0xff] }
  0xe6   :  { %1336 = vmatpush3.bf16.msra.mxu0 %v1335_v5  ;;  %v458_v5 = vld [vmem:[#allocation5 + $0x248] sm:$0xff] }
  0xe7   :  { %1337 = vmatprep.subr.bf16.mxu0 %v1583_v0  ;;  %v1386_v6 = vpack.c.bf16 %v458_v5, %v457_v4  ;;  %v653_v5 = vld [vmem:[#allocation5 + $0x350] sm:$0xff] }
  0xea   :  { %1339 = vmatpush3.bf16.msra.mxu0 %v1338_v8  ;;  %v460_v8 = vld [vmem:[#allocation5 + $0x258] sm:$0xff] }
  0xeb   :  { %1340 = vmatprep.subr.bf16.mxu0 %v1583_v0  ;;  %v1389_v9 = vpack.c.bf16 %v460_v8, %v459_v7  ;;  %v857_v8 = vld [vmem:[#allocation7 + $0x4] ss:$0 sm:$0xff] }
  0xee   :  { %1342 = vmatpush3.bf16.msra.mxu0 %v1341_v11 }
  0xef   :  { %1343 = vmatprep.subr.bf16.mxu0 %v1583_v0 }
  0xf2   :  { %1345 = vmatpush3.bf16.msra.mxu0 %v1344_v20  ;;  %v464_v20 = vld [vmem:[#allocation5 + $0x278] sm:$0xff] }
  0xf3   :  { %1346 = vmatprep.subr.bf16.mxu0 %v1583_v0  ;;  %v1395_v21 = vpack.c.bf16 %v464_v20, %v463_v19  ;;  %v740_v20 = vld [vmem:[#allocation5 + $0x380] sm:$0xff] }
  0xf6   :  { %1348 = vmatpush3.bf16.msra.mxu0 %v1347_v24  ;;  %v547_v24 = vld [vmem:[#allocation5 + $0x288] sm:$0xff] }
  0xf7   :  { %1373 = vmatprep.subr.bf16.mxu0 %v1583_v0  ;;  %v1398_v26 = vpack.c.bf16 %v547_v24, %v546_v22  ;;  %v742_v22 = vld [vmem:[#allocation5 + $0x390] sm:$0xff] }
 0x1ac   :  { %v151_v13 = vpop.f32.mrb[0].mxu0 }
 0x1ad   :  { %v152_v14 = vadd.f32 %v853_v12, %v151_v13  ;;  %v1031_v15 = vpop.f32.mrb[1].mxu0 }
 0x1af   :  { %v155_v16 = vmul.f32 0.2, %v152_v14 }
 0x1b1   :  { %v156_v17 = vmax.f32 %v152_v14, %v155_v16  ;;  %v461_v16 = vld [vmem:[#allocation5 + $0x260] sm:$0xff] }
 0x1b3   :  { %1065 = vmatmul.mubr.f32.vlgmr.msra.gmra.mrb[0].mxu1 %v156_v17  ;;  %v462_v17 = vld [vmem:[#allocation5 + $0x268] sm:$0xff] }
 0x1b4   :  { %1134 = vmatprep.mubr.msk.f32.mxu1 %vm1584_vm0, %v1585_v23  ;;  %1351 = vmatpush3.bf16.msra.mxu1 %v1350_v28  ;;  %v1392_v18 = vpack.c.bf16 %v462_v17, %v461_v16  ;;  %v1401_v28 = vpack.c.bf16 %v549_v27, %v548_v25  ;;  %v657_v17 = vld [vmem:[#allocation5 + $0x370] sm:$0xff]  ;;  %v743_v25 = vld [vmem:[#allocation5 + $0x398] sm:$0xff]  ;;  %v745_v27 = vld [vmem:[#allocation5 + $0x3a8] sm:$0xff] }
 0x1b5   :  { %1352 = vmatprep.subr.bf16.mxu1 %v1583_v0 }
 0x1b8   :  { %1354 = vmatpush3.bf16.msra.mxu1 %v1353_v30  ;;  %v551_v30 = vld [vmem:[#allocation5 + $0x2a8] sm:$0xff] }
 0x1b9   :  { %1355 = vmatprep.subr.bf16.mxu1 %v1583_v0  ;;  %v1404_v31 = vpack.c.bf16 %v551_v30, %v550_v29  ;;  %v746_v29 = vld [vmem:[#allocation5 + $0x3b0] sm:$0xff]  ;;  %v747_v30 = vld [vmem:[#allocation5 + $0x3b8] sm:$0xff] }
 0x1bc   :  { %1357 = vmatpush3.bf16.msra.mxu1 %v1356_v33  ;;  %v553_v33 = vld [vmem:[#allocation5 + $0x2b8] sm:$0xff] }
 0x1bd   :  { %1358 = vmatprep.subr.bf16.mxu1 %v1583_v0  ;;  %v1407_v34 = vpack.c.bf16 %v553_v33, %v552_v32  ;;  %v748_v32 = vld [vmem:[#allocation5 + $0x3c0] sm:$0xff]  ;;  %v749_v33 = vld [vmem:[#allocation5 + $0x3c8] sm:$0xff] }
 0x1c0   :  { %1360 = vmatpush3.bf16.msra.mxu1 %v1359_v36  ;;  %v555_v36 = vld [vmem:[#allocation5 + $0x2c8] sm:$0xff] }
 0x1c1   :  { %1361 = vmatprep.subr.bf16.mxu1 %v1583_v0  ;;  %v1410_v37 = vpack.c.bf16 %v555_v36, %v554_v35  ;;  %v750_v35 = vld [vmem:[#allocation5 + $0x3d0] sm:$0xff]  ;;  %v751_v36 = vld [vmem:[#allocation5 + $0x3d8] sm:$0xff] }
 0x1c4   :  { %1363 = vmatpush3.bf16.msra.mxu1 %v1362_v39  ;;  %v557_v39 = vld [vmem:[#allocation5 + $0x2d8] sm:$0xff] }
 0x1c5   :  { %1364 = vmatprep.subr.bf16.mxu1 %v1583_v0  ;;  %v1413_v40 = vpack.c.bf16 %v557_v39, %v556_v38  ;;  %v858_v38 = vld [vmem:[#allocation7 + $0x5] ss:$0 sm:$0xff] }
 0x1c8   :  { %1366 = vmatpush3.bf16.msra.mxu1 %v1365_v42 }
 0x1c9   :  { %1367 = vmatprep.subr.bf16.mxu1 %v1583_v0 }
 0x1cc   :  { %1369 = vmatpush3.bf16.msra.mxu1 %v1368_v51  ;;  %v561_v51 = vld [vmem:[#allocation5 + $0x2f8] sm:$0xff] }
 0x1cd   :  { %1370 = vmatprep.subr.bf16.mxu1 %v1583_v0  ;;  %v1419_v52 = vpack.c.bf16 %v561_v51, %v560_v50  ;;  %v859_v50 = vld [vmem:[#allocation7 + $0x6] ss:$0 sm:$0xff] }
 0x1d0   :  { %1372 = vmatpush3.bf16.msra.mxu1 %v1371_v54  ;;  %v644_v54 = vld [vmem:[#allocation5 + $0x308] sm:$0xff] }
 0x1d1   :  { %1397 = vmatprep.subr.bf16.mxu1 %v1583_v0  ;;  %v1422_v56 = vpack.c.bf16 %v644_v54, %v643_v53 }
 0x286   :  { %v248_v44 = vpop.f32.mrb[0].mxu1 }
 0x287   :  { %v249_v45 = vadd.f32 %v854_v43, %v248_v44  ;;  %v1066_v46 = vpop.f32.mrb[1].mxu1 }
 0x289   :  { %v252_v47 = vmul.f32 0.2, %v249_v45 }
 0x28b   :  { %v253_v48 = vmax.f32 %v249_v45, %v252_v47  ;;  %v558_v47 = vld [vmem:[#allocation5 + $0x2e0] sm:$0xff] }
 0x28d   :  { %1100 = vmatmul.mubr.f32.vlgmr.msra.gmra.mrb[2].mxu0 %v253_v48  ;;  %v559_v48 = vld [vmem:[#allocation5 + $0x2e8] sm:$0xff] }
 0x28e   :  { %1169 = vmatprep.mubr.msk.f32.mxu0 %vm1584_vm0, %v1585_v23  ;;  %1375 = vmatpush3.bf16.msra.mxu0 %v1374_v58  ;;  %v1416_v49 = vpack.c.bf16 %v559_v48, %v558_v47  ;;  %v1425_v58 = vpack.c.bf16 %v646_v57, %v645_v55  ;;  %v754_v47 = vld [vmem:[#allocation5 + $0x3f0] sm:$0xff]  ;;  %v755_v48 = vld [vmem:[#allocation5 + $0x3f8] sm:$0xff] }
 0x28f   :  { %1376 = vmatprep.subr.bf16.mxu0 %v1583_v0 }
 0x292   :  { %1378 = vmatpush3.bf16.msra.mxu0 %v1377_v60  ;;  %v648_v60 = vld [vmem:[#allocation5 + $0x328] sm:$0xff] }
 0x293   :  { %1379 = vmatprep.subr.bf16.mxu0 %v1583_v0  ;;  %v1428_v61 = vpack.c.bf16 %v648_v60, %v647_v59 }
 0x296   :  { %1381 = vmatpush3.bf16.msra.mxu0 %v1380_v63  ;;  %v650_v63 = vld [vmem:[#allocation5 + $0x338] sm:$0xff] }
 0x297   :  { %1382 = vmatprep.subr.bf16.mxu0 %v1583_v0  ;;  %v1431_v1 = vpack.c.bf16 %v650_v63, %v649_v62 }
 0x29a   :  { %1384 = vmatpush3.bf16.msra.mxu0 %v1383_v3  ;;  %v652_v3 = vld [vmem:[#allocation5 + $0x348] sm:$0xff] }
 0x29b   :  { %1385 = vmatprep.subr.bf16.mxu0 %v1583_v0  ;;  %v1434_v4 = vpack.c.bf16 %v652_v3, %v651_v2 }
 0x29e   :  { %1387 = vmatpush3.bf16.msra.mxu0 %v1386_v6  ;;  %v654_v6 = vld [vmem:[#allocation5 + $0x358] sm:$0xff] }
 0x29f   :  { %1388 = vmatprep.subr.bf16.mxu0 %v1583_v0  ;;  %v1437_v7 = vpack.c.bf16 %v654_v6, %v653_v5 }
 0x2a2   :  { %1390 = vmatpush3.bf16.msra.mxu0 %v1389_v9 }
 0x2a3   :  { %1391 = vmatprep.subr.bf16.mxu0 %v1583_v0 }
 0x2a6   :  { %1393 = vmatpush3.bf16.msra.mxu0 %v1392_v18  ;;  %v658_v18 = vld [vmem:[#allocation5 + $0x378] sm:$0xff] }
 0x2a7   :  { %1394 = vmatprep.subr.bf16.mxu0 %v1583_v0  ;;  %v1443_v19 = vpack.c.bf16 %v658_v18, %v657_v17 }
 0x2aa   :  { %1396 = vmatpush3.bf16.msra.mxu0 %v1395_v21  ;;  %v741_v21 = vld [vmem:[#allocation5 + $0x388] sm:$0xff] }
 0x2ab   :  { %1421 = vmatprep.subr.bf16.mxu0 %v1583_v0  ;;  %v1446_v24 = vpack.c.bf16 %v741_v21, %v740_v20 }
 0x360   :  { %v345_v11 = vpop.f32.mrb[2].mxu0 }
 0x361   :  { %v346_v12 = vadd.f32 %v855_v10, %v345_v11  ;;  %v1101_v13 = vpop.f32.mrb[3].mxu0 }
 0x363   :  { %v349_v14 = vmul.f32 0.2, %v346_v12 }
 0x365   :  { %v350_v15 = vmax.f32 %v346_v12, %v349_v14  ;;  %v655_v14 = vld [vmem:[#allocation5 + $0x360] sm:$0xff] }
 0x367   :  { %1135 = vmatmul.mubr.f32.vlgmr.msra.gmra.mrb[2].mxu1 %v350_v15  ;;  %v656_v15 = vld [vmem:[#allocation5 + $0x368] sm:$0xff] }
 0x368   :  { %1204 = vmatprep.mubr.msk.f32.mxu1 %vm1584_vm0, %v1585_v23  ;;  %1399 = vmatpush3.bf16.msra.mxu1 %v1398_v26  ;;  %v1440_v16 = vpack.c.bf16 %v656_v15, %v655_v14  ;;  %v1449_v26 = vpack.c.bf16 %v743_v25, %v742_v22 }
 0x369   :  { %1400 = vmatprep.subr.bf16.mxu1 %v1583_v0 }
 0x36c   :  { %1402 = vmatpush3.bf16.msra.mxu1 %v1401_v28 }
 0x36d   :  { %1403 = vmatprep.subr.bf16.mxu1 %v1583_v0 }
 0x370   :  { %1405 = vmatpush3.bf16.msra.mxu1 %v1404_v31  ;;  %v1455_v31 = vpack.c.bf16 %v747_v30, %v746_v29 }
 0x371   :  { %1406 = vmatprep.subr.bf16.mxu1 %v1583_v0 }
 0x374   :  { %1408 = vmatpush3.bf16.msra.mxu1 %v1407_v34  ;;  %v1458_v34 = vpack.c.bf16 %v749_v33, %v748_v32 }
 0x375   :  { %1409 = vmatprep.subr.bf16.mxu1 %v1583_v0 }
 0x378   :  { %1411 = vmatpush3.bf16.msra.mxu1 %v1410_v37  ;;  %v1461_v37 = vpack.c.bf16 %v751_v36, %v750_v35 }
 0x379   :  { %1412 = vmatprep.subr.bf16.mxu1 %v1583_v0 }
 0x37c   :  { %1414 = vmatpush3.bf16.msra.mxu1 %v1413_v40 }
 0x37d   :  { %1415 = vmatprep.subr.bf16.mxu1 %v1583_v0 }
 0x380   :  { %1417 = vmatpush3.bf16.msra.mxu1 %v1416_v49  ;;  %v1467_v49 = vpack.c.bf16 %v755_v48, %v754_v47 }
 0x381   :  { %1418 = vmatprep.subr.bf16.mxu1 %v1583_v0 }
 0x384   :  { %1420 = vmatpush3.bf16.msra.mxu1 %v1419_v52 }
 0x385   :  { %1445 = vmatprep.subr.bf16.mxu1 %v1583_v0 }
 0x43a   :  { %v442_v42 = vpop.f32.mrb[2].mxu1 }
 0x43b   :  { %v443_v43 = vadd.f32 %v856_v41, %v442_v42  ;;  %v1136_v44 = vpop.f32.mrb[3].mxu1 }
 0x43c   :  { %v752_v44 = vld [vmem:[#allocation5 + $0x3e0] sm:$0xff] }
 0x43d   :  { %v446_v45 = vmul.f32 0.2, %v443_v43 }
 0x43f   :  { %v447_v46 = vmax.f32 %v443_v43, %v446_v45  ;;  %v753_v45 = vld [vmem:[#allocation5 + $0x3e8] sm:$0xff] }
 0x441   :  { %1170 = vmatmul.mubr.f32.vlgmr.msra.gmra.mrb[4].mxu0 %v447_v46  ;;  %v1464_v46 = vpack.c.bf16 %v753_v45, %v752_v44 }
 0x442   :  { %1239 = vmatprep.mubr.msk.f32.mxu0 %vm1584_vm0, %v1585_v23  ;;  %1423 = vmatpush3.bf16.msra.mxu0 %v1422_v56  ;;  %v860_v56 = vld [vmem:[#allocation7 + $0x7] ss:$0 sm:$0xff] }
 0x443   :  { %1424 = vmatprep.subr.bf16.mxu0 %v1583_v0 }
 0x446   :  { %1426 = vmatpush3.bf16.msra.mxu0 %v1425_v58 }
 0x447   :  { %1427 = vmatprep.subr.bf16.mxu0 %v1583_v0 }
 0x44a   :  { %1429 = vmatpush3.bf16.msra.mxu0 %v1428_v61 }
 0x44b   :  { %1430 = vmatprep.subr.bf16.mxu0 %v1583_v0 }
 0x44e   :  { %1432 = vmatpush3.bf16.msra.mxu0 %v1431_v1 }
 0x44f   :  { %1433 = vmatprep.subr.bf16.mxu0 %v1583_v0 }
 0x452   :  { %1435 = vmatpush3.bf16.msra.mxu0 %v1434_v4 }
 0x453   :  { %1436 = vmatprep.subr.bf16.mxu0 %v1583_v0 }
 0x456   :  { %1438 = vmatpush3.bf16.msra.mxu0 %v1437_v7 }
 0x457   :  { %1439 = vmatprep.subr.bf16.mxu0 %v1583_v0 }
 0x45a   :  { %1441 = vmatpush3.bf16.msra.mxu0 %v1440_v16 }
 0x45b   :  { %1442 = vmatprep.subr.bf16.mxu0 %v1583_v0 }
 0x45e   :  { %1444 = vmatpush3.bf16.msra.mxu0 %v1443_v19 }
 0x514   :  { %v539_v9 = vpop.f32.mrb[4].mxu0 }
 0x515   :  { %v540_v10 = vadd.f32 %v857_v8, %v539_v9  ;;  %v1171_v11 = vpop.f32.mrb[5].mxu0 }
 0x517   :  { %v543_v12 = vmul.f32 0.2, %v540_v10 }
 0x519   :  { %v544_v13 = vmax.f32 %v540_v10, %v543_v12 }
 0x51b   :  { %1205 = vmatmul.mubr.f32.vlgmr.msra.gmra.mrb[4].mxu1 %v544_v13 }
 0x51c   :  { %1274 = vmatprep.mubr.msk.f32.mxu1 %vm1584_vm0, %v1585_v23  ;;  %1447 = vmatpush3.bf16.msra.mxu1 %v1446_v24  ;;  %v744_v23 = vld [vmem:[#allocation5 + $0x3a0] sm:$0xff] }
 0x51d   :  { %1448 = vmatprep.subr.bf16.mxu1 %v1583_v0  ;;  %v1452_v28 = vpack.c.bf16 %v745_v27, %v744_v23 }
 0x520   :  { %1450 = vmatpush3.bf16.msra.mxu1 %v1449_v26 }
 0x521   :  { %1451 = vmatprep.subr.bf16.mxu1 %v1583_v0 }
 0x524   :  { %1453 = vmatpush3.bf16.msra.mxu1 %v1452_v28 }
 0x525   :  { %1454 = vmatprep.subr.bf16.mxu1 %v1583_v0 }
 0x528   :  { %1456 = vmatpush3.bf16.msra.mxu1 %v1455_v31 }
 0x529   :  { %1457 = vmatprep.subr.bf16.mxu1 %v1583_v0 }
 0x52c   :  { %1459 = vmatpush3.bf16.msra.mxu1 %v1458_v34 }
 0x52d   :  { %1460 = vmatprep.subr.bf16.mxu1 %v1583_v0 }
 0x530   :  { %1462 = vmatpush3.bf16.msra.mxu1 %v1461_v37 }
 0x531   :  { %1463 = vmatprep.subr.bf16.mxu1 %v1583_v0 }
 0x534   :  { %1465 = vmatpush3.bf16.msra.mxu1 %v1464_v46 }
 0x535   :  { %1466 = vmatprep.subr.bf16.mxu1 %v1583_v0 }
 0x538   :  { %1468 = vmatpush3.bf16.msra.mxu1 %v1467_v49 }
 0x5ee   :  { %v636_v39 = vpop.f32.mrb[4].mxu1 }
 0x5ef   :  { %v637_v40 = vadd.f32 %v858_v38, %v636_v39  ;;  %v1206_v41 = vpop.f32.mrb[5].mxu1 }
 0x5f1   :  { %v640_v42 = vmul.f32 0.2, %v637_v40 }
 0x5f3   :  { %v641_v43 = vmax.f32 %v637_v40, %v640_v42 }
 0x5f5   :  { %1240 = vmatmul.mubr.f32.vlgmr.msra.gmra.mrb[6].mxu0 %v641_v43 }
 0x6c8   :  { %v733_v51 = vpop.f32.mrb[6].mxu0 }
 0x6c9   :  { %v734_v52 = vadd.f32 %v859_v50, %v733_v51  ;;  %v1241_v53 = vpop.f32.mrb[7].mxu0 }
 0x6cb   :  { %v737_v54 = vmul.f32 0.2, %v734_v52 }
 0x6cd   :  { %v738_v55 = vmax.f32 %v734_v52, %v737_v54 }
 0x6cf   :  { %1275 = vmatmul.mubr.f32.vlgmr.msra.gmra.mrb[6].mxu1 %v738_v55 }
 0x7a2   :  { %v830_v57 = vpop.f32.mrb[6].mxu1 }
 0x7a3   :  { %v831_v58 = vadd.f32 %v860_v56, %v830_v57  ;;  %v1276_v59 = vpop.f32.mrb[7].mxu1 }
 0x7a5   :  { %v834_v60 = vmul.f32 0.2, %v831_v58 }
 0x7a7   :  { %v835_v61 = vmax.f32 %v831_v58, %v834_v60 }
 0x7a9   :  { %836 = vst [vmem:[#allocation8] sm:$0xff] %v835_v61 }
 0x7aa   :  { %1559 = shalt.err (!%p1556_p0)
}
 0x7ab   :  { %s1560_s27 = scalar_lea.hbm %s1743_s3, 128 }
 0x7ac   :  { %p1561_p1 = scmp.ne.s32.totalorder %s1743_s3, %s1560_s27  ;;  %p1564_p2 = scmp.lt.u32.totalorder %s1560_s27, %s1743_s3 }
 0x7ae   :  { %p1566_p3 = pnand %p1564_p2, %p1561_p1 }
 0x7b0   :  { %1569 = shalt.err (!%p1566_p3)
}
 0x7b1   :  { %846 = dma.vmem_to_hbm [thread:$0]  %s844_s23, 128, %s1743_s3, [#allocation4]  }
 0x7b2   :  { %1574 = dma.done.wait [#allocation4], 128  }
 0x7b3   :  { %1575 = vsyncadd [#allocation4], 4294967168 }
 0x7b4   :  { %850 = vsyncpa [#allocation3], 1 }
 0x7b5   :  { %851 = vsyncpa [#allocation6], 1 }
 0x7b6   :  { %852 = vsyncpa [#allocation4], 1 }

</bundles_post_ra>
